<compile_context>
chip_gen: v7x
topology: tpu7x:2x2x1
jax: 0.10.0
libtpu: 0.0.40
codegen_flags: <defaults>
</compile_context>

<pallas_src>
import functools
import math

import jax
import jax.numpy as jnp
import numpy as np
from jax.experimental import pallas as pl
from jax.experimental.pallas import tpu as pltpu


# ----------------------------- Pallas kernels -----------------------------

def _ln_qkv_kernel(x_ref, g_ref, be_ref, w_ref, b_ref, o_ref):
    """Fused LayerNorm(norm1) + QKV projection for a row tile."""
    x = x_ref[...]                                           # (TR, C) f32
    mean = jnp.mean(x, axis=-1, keepdims=True)
    var = jnp.mean((x - mean) ** 2, axis=-1, keepdims=True)
    xn = (x - mean) * jax.lax.rsqrt(var + 1e-5)
    xn = xn * g_ref[...] + be_ref[...]                       # (TR, C)
    o_ref[...] = (
        jnp.dot(xn.astype(jnp.bfloat16), w_ref[...],
                preferred_element_type=jnp.float32)
        + b_ref[...]
    )


def _window_attn_kernel(qkv_ref, bias_ref, *rest, num_heads, nW, has_mask):
    """Window MHSA for a block of WB windows (WB a multiple of nW).

    scores / softmax / PV batched over windows; heads unrolled at trace time.
    Output projection fused (single (WB*N, C)@(C, C) matmul)."""
    if has_mask:
        mask_ref, wp_ref, bp_ref, o_ref = rest
    else:
        wp_ref, bp_ref, o_ref = rest

    qkv = qkv_ref[...]                                       # (WB, N, 3C) f32
    WB, N, C3 = qkv.shape
    C = C3 // 3
    hd = C // num_heads

    bias = bias_ref[...]                                     # (nH, N, N) f32
    if has_mask:
        mask = mask_ref[...]                                 # (nW, N, N) f32

    head_outs = []
    for h in range(num_heads):                               # trace-time unroll
        qh = qkv[:, :, h * hd:(h + 1) * hd].astype(jnp.bfloat16)          # (WB,N,hd)
        kh = qkv[:, :, C + h * hd:C + (h + 1) * hd].astype(jnp.bfloat16)
        vh = qkv[:, :, 2 * C + h * hd:2 * C + (h + 1) * hd].astype(jnp.bfloat16)

        # scale already folded into Q columns of Wqkv at parameter setup.
        s = jnp.einsum('bnd,bmd->bnm', qh, kh,
                       preferred_element_type=jnp.float32)   # (WB, N, N) f32
        s = s + bias[h][None]
        if has_mask:
            s = (s.reshape(WB // nW, nW, N, N) + mask[None]).reshape(WB, N, N)

        s = s - jnp.max(s, axis=-1, keepdims=True)
        p = jnp.exp(s)
        p = p * pl.reciprocal(jnp.sum(p, axis=-1, keepdims=True), approx=True)

        head_outs.append(
            jnp.einsum('bnm,bmd->bnd', p.astype(jnp.bfloat16), vh,
                       preferred_element_type=jnp.float32))  # (WB, N, hd) f32

    out = jnp.concatenate(head_outs, axis=-1)                # (WB, N, C)
    out = (
        jnp.dot(out.reshape(WB * N, C).astype(jnp.bfloat16), wp_ref[...],
                preferred_element_type=jnp.float32)
        + bp_ref[...]
    )
    o_ref[...] = out.reshape(WB, N, C)


def _res_ln_mlp_kernel(s_ref, a_ref, g_ref, be_ref,
                       w1_ref, b1_ref, w2_ref, b2_ref, o_ref):
    """Fused: x2 = shortcut + attn; out = x2 + fc2(GELU(fc1(LN(x2))))."""
    x = s_ref[...] + a_ref[...]                              # (TR, C) f32
    mean = jnp.mean(x, axis=-1, keepdims=True)
    var = jnp.mean((x - mean) ** 2, axis=-1, keepdims=True)
    xn = (x - mean) * jax.lax.rsqrt(var + 1e-5)
    xn = xn * g_ref[...] + be_ref[...]

    h = (jnp.dot(xn.astype(jnp.bfloat16), w1_ref[...],
                 preferred_element_type=jnp.float32) + b1_ref[...])
    # exact (erf-based) GELU, matching torch.nn.GELU default
    h = 0.5 * h * (1.0 + jax.lax.erf(h * (1.0 / math.sqrt(2.0))))
    y = (jnp.dot(h.astype(jnp.bfloat16), w2_ref[...],
                 preferred_element_type=jnp.float32) + b2_ref[...])
    o_ref[...] = x + y


# ---------------------------- kernel wrappers ------------------------------

_ROW_TILE = 256  # rows per grid step for the token-parallel kernels


def ln_qkv(x2d, gamma, beta, wqkv_bf16, bqkv):
    R, C = x2d.shape
    C3 = wqkv_bf16.shape[1]
    TR = min(_ROW_TILE, R)
    Rp = pl.cdiv(R, TR) * TR
    if Rp != R:
        x2d = jnp.pad(x2d, ((0, Rp - R), (0, 0)))
    out = pl.pallas_call(
        _ln_qkv_kernel,
        out_shape=jax.ShapeDtypeStruct((Rp, C3), jnp.float32),
        grid=(Rp // TR,),
        in_specs=[
            pl.BlockSpec((TR, C), lambda i: (i, 0)),
            pl.BlockSpec((1, C), lambda i: (0, 0)),
            pl.BlockSpec((1, C), lambda i: (0, 0)),
            pl.BlockSpec((C, C3), lambda i: (0, 0)),
            pl.BlockSpec((1, C3), lambda i: (0, 0)),
        ],
        out_specs=pl.BlockSpec((TR, C3), lambda i: (i, 0)),
        compiler_params=pltpu.CompilerParams(dimension_semantics=("parallel",)),
    )(x2d, gamma, beta, wqkv_bf16, bqkv)
    return out[:R] if Rp != R else out


def window_attention(qkv_windows, rel_bias, attn_mask, wproj_bf16, bproj,
                     num_heads, nW, WB, has_mask):
    Bw, N, C3 = qkv_windows.shape
    C = C3 // 3
    kernel = functools.partial(_window_attn_kernel, num_heads=num_heads,
                               nW=nW, has_mask=has_mask)
    in_specs = [
        pl.BlockSpec((WB, N, C3), lambda j: (j, 0, 0)),
        pl.BlockSpec((num_heads, N, N), lambda j: (0, 0, 0)),
    ]
    args = [qkv_windows, rel_bias]
    if has_mask:
        in_specs.append(pl.BlockSpec((nW, N, N), lambda j: (0, 0, 0)))
        args.append(attn_mask)
    in_specs += [
        pl.BlockSpec((C, C), lambda j: (0, 0)),
        pl.BlockSpec((1, C), lambda j: (0, 0)),
    ]
    args += [wproj_bf16, bproj]
    return pl.pallas_call(
        kernel,
        out_shape=jax.ShapeDtypeStruct((Bw, N, C), jnp.float32),
        grid=(Bw // WB,),
        in_specs=in_specs,
        out_specs=pl.BlockSpec((WB, N, C), lambda j: (j, 0, 0)),
        compiler_params=pltpu.CompilerParams(dimension_semantics=("parallel",)),
    )(*args)


def res_ln_mlp(short2d, attn2d, gamma, beta, w1_bf16, b1, w2_bf16, b2):
    R, C = short2d.shape
    Hd = w1_bf16.shape[1]
    TR = min(_ROW_TILE, R)
    Rp = pl.cdiv(R, TR) * TR
    if Rp != R:
        short2d = jnp.pad(short2d, ((0, Rp - R), (0, 0)))
        attn2d = jnp.pad(attn2d, ((0, Rp - R), (0, 0)))
    out = pl.pallas_call(
        _res_ln_mlp_kernel,
        out_shape=jax.ShapeDtypeStruct((Rp, C), jnp.float32),
        grid=(Rp // TR,),
        in_specs=[
            pl.BlockSpec((TR, C), lambda i: (i, 0)),
            pl.BlockSpec((TR, C), lambda i: (i, 0)),
            pl.BlockSpec((1, C), lambda i: (0, 0)),
            pl.BlockSpec((1, C), lambda i: (0, 0)),
            pl.BlockSpec((C, Hd), lambda i: (0, 0)),
            pl.BlockSpec((1, Hd), lambda i: (0, 0)),
            pl.BlockSpec((Hd, C), lambda i: (0, 0)),
            pl.BlockSpec((1, C), lambda i: (0, 0)),
        ],
        out_specs=pl.BlockSpec((TR, C), lambda i: (i, 0)),
        compiler_params=pltpu.CompilerParams(dimension_semantics=("parallel",)),
    )(short2d, attn2d, gamma, beta, w1_bf16, b1, w2_bf16, b2)
    return out[:R] if Rp != R else out


# ------------------------------- JAX glue ----------------------------------
# TODO(synk): window partition/reverse + cyclic roll are kept as XLA
# reshape/transpose glue (not expressed via BlockSpec index_map gather).

def window_partition(x, ws):
    B, H, W, C = x.shape
    x = x.reshape(B, H // ws, ws, W // ws, ws, C)
    return x.transpose(0, 1, 3, 2, 4, 5).reshape(-1, ws, ws, C)


def window_reverse(windows, ws, H, W):
    B = windows.shape[0] // (H * W // ws // ws)
    x = windows.reshape(B, H // ws, W // ws, ws, ws, -1)
    return x.transpose(0, 1, 3, 2, 4, 5).reshape(B, H, W, -1)


def compute_relative_position_index(ws):
    coords_h = np.arange(ws)
    coords_w = np.arange(ws)
    coords = np.stack(np.meshgrid(coords_h, coords_w, indexing="ij"))   # (2, ws, ws)
    coords_flatten = coords.reshape(2, -1)                              # (2, N)
    rel = coords_flatten[:, :, None] - coords_flatten[:, None, :]       # (2, N, N)
    rel = rel.transpose(1, 2, 0).copy()
    rel[..., 0] += ws - 1
    rel[..., 1] += ws - 1
    rel[..., 0] *= 2 * ws - 1
    return rel.sum(-1)                                                  # (N, N)


def compute_shift_mask(Hp, Wp, ws, shift):
    img_mask = np.zeros((1, Hp, Wp, 1), dtype=np.float32)
    h_slices = (slice(0, -ws), slice(-ws, -shift), slice(-shift, None))
    w_slices = (slice(0, -ws), slice(-ws, -shift), slice(-shift, None))
    cnt = 0
    for hs in h_slices:
        for wsl in w_slices:
            img_mask[:, hs, wsl, :] = cnt
            cnt += 1
    mw = np.asarray(window_partition(jnp.asarray(img_mask), ws)).reshape(-1, ws * ws)
    attn_mask = mw[:, None, :] - mw[:, :, None]
    attn_mask = np.where(attn_mask != 0, -100.0, 0.0).astype(np.float32)
    return jnp.asarray(attn_mask)                                       # (nW, N, N)


def _choose_window_block(B, nW, N, C, budget_bytes=4 * 1024 * 1024):
    """Pick WB = g*nW windows per grid step, g a divisor of B, within budget."""
    per_window = N * 4 * C * 4  # qkv input (3C) + output (C), f32
    g = max(1, min(B, budget_bytes // max(1, nW * per_window)))
    while B % g:
        g -= 1
    return g * nW


def swin_block_forward(x, params, H, W, window_size, shift_size, num_heads,
                       mask_matrix):
    B, L, C = x.shape
    assert L == H * W
    ws = window_size
    N = ws * ws

    x2d = x.reshape(B * L, C)

    # --- fused norm1 + QKV projection over all tokens (scale pre-folded) ---
    qkv = ln_qkv(x2d, params["norm1_g"], params["norm1_b"],
                 params["wqkv"], params["bqkv"])                  # (B*L, 3C)
    qkv = qkv.reshape(B, H, W, 3 * C)

    pad_r = (ws - W % ws) % ws
    pad_b = (ws - H % ws) % ws
    qkv = jnp.pad(qkv, ((0, 0), (0, pad_b), (0, pad_r), (0, 0)))
    Hp, Wp = H + pad_b, W + pad_r
    nW = (Hp // ws) * (Wp // ws)

    has_mask = shift_size > 0
    if has_mask:
        qkv = jnp.roll(qkv, shift=(-shift_size, -shift_size), axis=(1, 2))
        attn_mask = mask_matrix
    else:
        attn_mask = None   # mask-free kernel variant (no zero-mask DMA/add)

    qkv_windows = window_partition(qkv, ws).reshape(-1, N, 3 * C)

    # relative position bias (nH, N, N), gathered in JAX
    rel_idx = params["rel_pos_index"].reshape(-1)
    rel_bias = params["rel_pos_table"][rel_idx].reshape(N, N, num_heads)
    rel_bias = jnp.transpose(rel_bias, (2, 0, 1))

    WB = _choose_window_block(B, nW, N, C)

    attn_windows = window_attention(qkv_windows, rel_bias, attn_mask,
                                    params["wproj"], params["bproj"],
                                    num_heads, nW, WB, has_mask)  # (Bw, N, C)

    attn_windows = attn_windows.reshape(-1, ws, ws, C)
    shifted = window_reverse(attn_windows, ws, Hp, Wp)
    if has_mask:
        shifted = jnp.roll(shifted, shift=(shift_size, shift_size), axis=(1, 2))
    attn_tok = shifted[:, :H, :W, :].reshape(B * L, C)

    # --- fused shortcut add + norm2 + MLP + residual ---
    out = res_ln_mlp(x2d, attn_tok, params["norm2_g"], params["norm2_b"],
                     params["w1"], params["b1"], params["w2"], params["b2"])
    return out.reshape(B, L, C)


# ------------------------------ entry point --------------------------------

if __name__ == "__main__":
    # small config consistent with the module
    B, H, W = 2, 8, 8
    C = 32
    num_heads = 4
    window_size = 4
    shift_size = 2
    mlp_ratio = 4.0
    hidden = int(C * mlp_ratio)
    L = H * W

    head_dim = C // num_heads
    scale = head_dim ** (-0.5)

    key = jax.random.PRNGKey(0)
    ks = jax.random.split(key, 10)

    # qkv Linear(dim, 3*dim) stored transposed for x @ W; fold qk scale into
    # the Q columns once at parameter-setup time.
    wqkv = (0.02 * jax.random.normal(ks[0], (C, 3 * C))).astype(jnp.float32)
    bqkv = (0.01 * jax.random.normal(ks[1], (1, 3 * C))).astype(jnp.float32)
    scale_vec = jnp.concatenate(
        [jnp.full((C,), scale, jnp.float32), jnp.ones((2 * C,), jnp.float32)])
    wqkv = wqkv * scale_vec[None, :]
    bqkv = bqkv * scale_vec[None, :]

    params = {
        "norm1_g": jnp.ones((1, C), jnp.float32),
        "norm1_b": jnp.zeros((1, C), jnp.float32),
        "norm2_g": jnp.ones((1, C), jnp.float32),
        "norm2_b": jnp.zeros((1, C), jnp.float32),
        # matmul weights kept in bf16 (MXU operands); biases / LN params f32
        "wqkv": wqkv.astype(jnp.bfloat16),
        "bqkv": bqkv,
        "wproj": (0.02 * jax.random.normal(ks[2], (C, C))).astype(jnp.bfloat16),
        "bproj": (0.01 * jax.random.normal(ks[3], (1, C))).astype(jnp.float32),
        "rel_pos_table": (0.02 * jax.random.normal(
            ks[4], ((2 * window_size - 1) ** 2, num_heads))).astype(jnp.float32),
        "rel_pos_index": jnp.asarray(
            compute_relative_position_index(window_size), jnp.int32),
        "w1": (0.02 * jax.random.normal(ks[5], (C, hidden))).astype(jnp.bfloat16),
        "b1": (0.01 * jax.random.normal(ks[6], (1, hidden))).astype(jnp.float32),
        "w2": (0.02 * jax.random.normal(ks[7], (hidden, C))).astype(jnp.bfloat16),
        "b2": (0.01 * jax.random.normal(ks[8], (1, C))).astype(jnp.float32),
    }

    x = jax.random.normal(ks[9], (B, L, C), jnp.float32)

    # attention mask for the cyclic shift (SW-MSA), as in Swin's BasicLayer
    Hp = int(np.ceil(H / window_size)) * window_size
    Wp = int(np.ceil(W / window_size)) * window_size
    mask_matrix = compute_shift_mask(Hp, Wp, window_size, shift_size)

    out = swin_block_forward(x, params, H, W, window_size, shift_size,
                             num_heads, mask_matrix)
    out = jax.block_until_ready(out)
    assert out.shape == (B, L, C)
    assert bool(jnp.all(jnp.isfinite(out)))
    print("KERNEL_OK")
</pallas_src>

<mosaic_0001>
module attributes {stable_mosaic.version = 11 : i64} {
  func.func @_ln_qkv_kernel(%arg0: i32, %arg1: memref<128x32xf32, #tpu.memory_space<vmem>>, %arg2: memref<1x32xf32, #tpu.memory_space<vmem>>, %arg3: memref<1x32xf32, #tpu.memory_space<vmem>>, %arg4: memref<32x96xbf16, #tpu.memory_space<vmem>>, %arg5: memref<1x96xf32, #tpu.memory_space<vmem>>, %arg6: memref<128x96xf32, #tpu.memory_space<vmem>>) attributes {dimension_semantics = [#tpu.dimension_semantics<parallel>], iteration_bounds = array<i64: 1>, scalar_prefetch = 0 : i64, scratch_operands = 0 : i64, tpu.core_type = #tpu.core_type<tc>, window_params = [{transform_indices = @transform_0, window_bounds = array<i64: 128, 32>}, {pipeline_mode = #tpu.pipeline_mode<synchronous>, transform_indices = @transform_1, window_bounds = array<i64: 1, 32>}, {pipeline_mode = #tpu.pipeline_mode<synchronous>, transform_indices = @transform_2, window_bounds = array<i64: 1, 32>}, {pipeline_mode = #tpu.pipeline_mode<synchronous>, transform_indices = @transform_3, window_bounds = array<i64: 32, 96>}, {pipeline_mode = #tpu.pipeline_mode<synchronous>, transform_indices = @transform_4, window_bounds = array<i64: 1, 96>}, {transform_indices = @transform_5, window_bounds = array<i64: 128, 96>}]} {
    %c0 = arith.constant 0 : index
    %c0_0 = arith.constant 0 : index
    %0 = vector.load %arg1[%c0, %c0_0] : memref<128x32xf32, #tpu.memory_space<vmem>>, vector<128x32xf32>
    %cst = arith.constant dense<0.000000e+00> : vector<128xf32>
    %1 = vector.multi_reduction <add>, %0, %cst [1] : vector<128x32xf32> to vector<128xf32>
    %2 = vector.shape_cast %1 : vector<128xf32> to vector<128x1xf32>
    %cst_1 = arith.constant 3.200000e+01 : f32
    %3 = vector.broadcast %cst_1 : f32 to vector<128x1xf32>
    %4 = arith.divf %2, %3 : vector<128x1xf32>
    %5 = vector.broadcast %4 : vector<128x1xf32> to vector<128x32xf32>
    %6 = arith.subf %0, %5 : vector<128x32xf32>
    %7 = arith.mulf %6, %6 : vector<128x32xf32>
    %cst_2 = arith.constant dense<0.000000e+00> : vector<128xf32>
    %8 = vector.multi_reduction <add>, %7, %cst_2 [1] : vector<128x32xf32> to vector<128xf32>
    %9 = vector.shape_cast %8 : vector<128xf32> to vector<128x1xf32>
    %cst_3 = arith.constant 3.200000e+01 : f32
    %10 = vector.broadcast %cst_3 : f32 to vector<128x1xf32>
    %11 = arith.divf %9, %10 : vector<128x1xf32>
    %12 = vector.broadcast %4 : vector<128x1xf32> to vector<128x32xf32>
    %13 = arith.subf %0, %12 : vector<128x32xf32>
    %cst_4 = arith.constant 9.99999974E-6 : f32
    %14 = vector.broadcast %cst_4 : f32 to vector<128x1xf32>
    %15 = arith.addf %11, %14 : vector<128x1xf32>
    %16 = math.rsqrt %15 : vector<128x1xf32>
    %17 = vector.broadcast %16 : vector<128x1xf32> to vector<128x32xf32>
    %18 = arith.mulf %13, %17 : vector<128x32xf32>
    %c0_5 = arith.constant 0 : index
    %c0_6 = arith.constant 0 : index
    %19 = vector.load %arg2[%c0_5, %c0_6] : memref<1x32xf32, #tpu.memory_space<vmem>>, vector<1x32xf32>
    %20 = vector.broadcast %19 : vector<1x32xf32> to vector<128x32xf32>
    %21 = arith.mulf %18, %20 : vector<128x32xf32>
    %c0_7 = arith.constant 0 : index
    %c0_8 = arith.constant 0 : index
    %22 = vector.load %arg3[%c0_7, %c0_8] : memref<1x32xf32, #tpu.memory_space<vmem>>, vector<1x32xf32>
    %23 = vector.broadcast %22 : vector<1x32xf32> to vector<128x32xf32>
    %24 = arith.addf %21, %23 : vector<128x32xf32>
    %25 = arith.truncf %24 : vector<128x32xf32> to vector<128x32xbf16>
    %c0_9 = arith.constant 0 : index
    %c0_10 = arith.constant 0 : index
    %26 = vector.load %arg4[%c0_9, %c0_10] : memref<32x96xbf16, #tpu.memory_space<vmem>>, vector<32x96xbf16>
    %cst_11 = arith.constant dense<0.000000e+00> : vector<128x96xf32>
    %27 = tpu.matmul %25, %26, %cst_11 {dimension_numbers = #tpu.dot_dimension_numbers<[1], [0], [0], [1], [0, 0, 1, 1], [], []>} : vector<128x32xbf16>, vector<32x96xbf16>, vector<128x96xf32> -> vector<128x96xf32>
    %c0_12 = arith.constant 0 : index
    %c0_13 = arith.constant 0 : index
    %28 = vector.load %arg5[%c0_12, %c0_13] : memref<1x96xf32, #tpu.memory_space<vmem>>, vector<1x96xf32>
    %29 = vector.broadcast %28 : vector<1x96xf32> to vector<128x96xf32>
    %30 = arith.addf %27, %29 : vector<128x96xf32>
    %c0_14 = arith.constant 0 : index
    %c0_15 = arith.constant 0 : index
    %31 = vector.load %arg6[%c0_14, %c0_15] : memref<128x96xf32, #tpu.memory_space<vmem>>, vector<128x96xf32>
    tpu.vector_store %arg6[%c0_14, %c0_15], %30 {strides = array<i32>} : memref<128x96xf32, #tpu.memory_space<vmem>>, vector<128x96xf32>,
    return
  }
  func.func @transform_0(%arg0: i32) -> (i32, i32) {
    %c0_i32 = arith.constant 0 : i32
    %c0_i32_0 = arith.constant 0 : i32
    return %arg0, %c0_i32 : i32, i32
  }
  func.func @transform_1(%arg0: i32) -> (i32, i32) {
    %c0_i32 = arith.constant 0 : i32
    %c0_i32_0 = arith.constant 0 : i32
    %c0_i32_1 = arith.constant 0 : i32
    return %c0_i32, %c0_i32_0 : i32, i32
  }
  func.func @transform_2(%arg0: i32) -> (i32, i32) {
    %c0_i32 = arith.constant 0 : i32
    %c0_i32_0 = arith.constant 0 : i32
    %c0_i32_1 = arith.constant 0 : i32
    return %c0_i32, %c0_i32_0 : i32, i32
  }
  func.func @transform_3(%arg0: i32) -> (i32, i32) {
    %c0_i32 = arith.constant 0 : i32
    %c0_i32_0 = arith.constant 0 : i32
    %c0_i32_1 = arith.constant 0 : i32
    return %c0_i32, %c0_i32_0 : i32, i32
  }
  func.func @transform_4(%arg0: i32) -> (i32, i32) {
    %c0_i32 = arith.constant 0 : i32
    %c0_i32_0 = arith.constant 0 : i32
    %c0_i32_1 = arith.constant 0 : i32
    return %c0_i32, %c0_i32_0 : i32, i32
  }
  func.func @transform_5(%arg0: i32) -> (i32, i32) {
    %c0_i32 = arith.constant 0 : i32
    %c0_i32_0 = arith.constant 0 : i32
    return %arg0, %c0_i32 : i32, i32
  }
}

</mosaic_0001>

<bundles_post_ra>
// kernel: tpu_custom_call.1
= control target key start
LH: loop header
LB: loop body
LE: loop exit
PB: predicated region body
PF: predicated region fallthrough
CT: control target
= control target key end

     0   :  { %vm37_vm0 = vcmask 261120   ;;  %vm445_vm1 = vcmask 785408   ;;  %s900_s0 = inlined_call_operand.vmem [shape: f32[128,32], index: 0, kind: input, shape index: {}]   ;;  %s901_s3 = inlined_call_operand.vmem [shape: bf16[32,96], index: 3, kind: input, shape index: {}]   ;;  %s902_s1 = inlined_call_operand.vmem [shape: f32[1,32], index: 1, kind: input, shape index: {}]   ;;  %s903_s2 = inlined_call_operand.vmem [shape: f32[1,32], index: 2, kind: input, shape index: {}]   ;;  %s904_s4 = inlined_call_operand.vmem [shape: f32[1,96], index: 4, kind: input, shape index: {}]   ;;  %s905_s5 = inlined_call_operand.vmem [shape: f32[128,96], index: 5, kind: output, shape index: {}]  }
   0x1   :  { %v21_v0 = vld [vmem:[%s900_s0] sm:$0xff]  ;;  %v22_v2 = vld [vmem:[%s900_s0 + $0x8] sm:$0xff]  ;;  %v23_v8 = vld [vmem:[%s900_s0 + $0x10] sm:$0xff] }
   0x2   :  { %v29_v1 = vld [vmem:[%s900_s0 + $0x40] sm:$0xff]  ;;  %v38_v3 = vsel %vm37_vm0, %v21_v0, 0.0  ;;  %v30_v5 = vld [vmem:[%s900_s0 + $0x48] sm:$0xff]  ;;  %v41_v6 = vsel %vm37_vm0, %v22_v2, 0.0  ;;  %v24_v9 = vld [vmem:[%s900_s0 + $0x18] sm:$0xff]  ;;  %v44_v10 = vsel %vm37_vm0, %v23_v8, 0.0 }
   0x3   :  { %v62_v4 = vsel %vm37_vm0, %v29_v1, 0.0  ;;  %39 = vadd.xlane.f32.xlu0 %v38_v3  ;;  %v65_v7 = vsel %vm37_vm0, %v30_v5, 0.0  ;;  %v47_v11 = vsel %vm37_vm0, %v24_v9, 0.0  ;;  %v604_v12 = vld [vmem:[%s900_s0 + $0x50] sm:$0xff]  ;;  %v609_v13 = vld [vmem:[%s900_s0 + $0x58] sm:$0xff]  ;;  %v618_v16 = vld [vmem:[%s900_s0 + $0x20] sm:$0xff] }
   0x4   :  { %63 = vadd.xlane.f32.xlu1 %v62_v4  ;;  %v68_v14 = vsel %vm37_vm0, %v604_v12, 0.0  ;;  %v71_v15 = vsel %vm37_vm0, %v609_v13, 0.0  ;;  %v623_v17 = vld [vmem:[%s900_s0 + $0x28] sm:$0xff]  ;;  %v50_v18 = vsel %vm37_vm0, %v618_v16, 0.0  ;;  %v632_v20 = vld [vmem:[%s900_s0 + $0x60] sm:$0xff]  ;;  %v646_v24 = vld [vmem:[%s900_s0 + $0x30] sm:$0xff] }
   0x5   :  { %v53_v19 = vsel %vm37_vm0, %v623_v17, 0.0  ;;  %v637_v21 = vld [vmem:[%s900_s0 + $0x68] sm:$0xff]  ;;  %v74_v22 = vsel %vm37_vm0, %v632_v20, 0.0  ;;  %v651_v25 = vld [vmem:[%s900_s0 + $0x38] sm:$0xff]  ;;  %v56_v26 = vsel %vm37_vm0, %v646_v24, 0.0  ;;  %v660_v28 = vld [vmem:[%s900_s0 + $0x70] sm:$0xff] }
   0x6   :  { %v77_v23 = vsel %vm37_vm0, %v637_v21, 0.0  ;;  %v59_v27 = vsel %vm37_vm0, %v651_v25, 0.0  ;;  %v665_v29 = vld [vmem:[%s900_s0 + $0x78] sm:$0xff]  ;;  %v80_v30 = vsel %vm37_vm0, %v660_v28, 0.0 }
   0x7   :  { %42 = vadd.xlane.f32.xlu0 %v41_v6  ;;  %v83_v31 = vsel %vm37_vm0, %v665_v29, 0.0 }
   0x8   :  { %66 = vadd.xlane.f32.xlu1 %v65_v7 }
   0xb   :  { %45 = vadd.xlane.f32.xlu0 %v44_v10 }
   0xc   :  { %48 = vadd.xlane.f32.xlu1 %v47_v11 }
   0xf   :  { %69 = vadd.xlane.f32.xlu0 %v68_v14 }
  0x10   :  { %72 = vadd.xlane.f32.xlu1 %v71_v15 }
  0x13   :  { %51 = vadd.xlane.f32.xlu0 %v50_v18 }
  0x14   :  { %54 = vadd.xlane.f32.xlu1 %v53_v19 }
  0x17   :  { %75 = vadd.xlane.f32.xlu0 %v74_v22 }
  0x18   :  { %78 = vadd.xlane.f32.xlu1 %v77_v23 }
  0x1b   :  { %57 = vadd.xlane.f32.xlu0 %v56_v26 }
  0x1c   :  { %60 = vadd.xlane.f32.xlu1 %v59_v27 }
  0x1f   :  { %81 = vadd.xlane.f32.xlu0 %v80_v30 }
  0x20   :  { %84 = vadd.xlane.f32.xlu1 %v83_v31 }
  0x90   :  { %v40_v32 = vpop.xlane.xlu0 %39 }
  0x91   :  { %v64_v33 = vpop.xlane.xlu1 %63  ;;  %v87_v34 = vmul.f32 0.03125, %v40_v32 }
  0x92   :  { %v95_v35 = vmul.f32 0.03125, %v64_v33 }
  0x93   :  { %v671_v36 = vsub.f32 %v21_v0, %v87_v34 }
  0x94   :  { %v673_v37 = vsub.f32 %v29_v1, %v95_v35  ;;  %v43_v38 = vpop.xlane.xlu0 %42 }
  0x95   :  { %v67_v39 = vpop.xlane.xlu1 %66  ;;  %v88_v40 = vmul.f32 0.03125, %v43_v38  ;;  %v119_v42 = vmul.f32 %v671_v36, %v671_v36 }
  0x96   :  { %v96_v41 = vmul.f32 0.03125, %v67_v39  ;;  %v127_v43 = vmul.f32 %v673_v37, %v673_v37 }
  0x97   :  { %v679_v44 = vsub.f32 %v22_v2, %v88_v40  ;;  %v135_v46 = vsel %vm37_vm0, %v119_v42, 0.0 }
  0x98   :  { %v681_v45 = vsub.f32 %v30_v5, %v96_v41  ;;  %136 = vadd.xlane.f32.xlu0 %v135_v46  ;;  %v46_v47 = vpop.xlane.xlu0 %45  ;;  %v159_v49 = vsel %vm37_vm0, %v127_v43, 0.0 }
  0x99   :  { %v49_v48 = vpop.xlane.xlu1 %48  ;;  %v89_v50 = vmul.f32 0.03125, %v46_v47  ;;  %v120_v52 = vmul.f32 %v679_v44, %v679_v44 }
  0x9a   :  { %v90_v51 = vmul.f32 0.03125, %v49_v48  ;;  %v128_v53 = vmul.f32 %v681_v45, %v681_v45 }
  0x9b   :  { %v689_v54 = vsub.f32 %v23_v8, %v89_v50  ;;  %v138_v56 = vsel %vm37_vm0, %v120_v52, 0.0 }
  0x9c   :  { %v691_v55 = vsub.f32 %v24_v9, %v90_v51  ;;  %160 = vadd.xlane.f32.xlu0 %v159_v49  ;;  %139 = vadd.xlane.f32.xlu1 %v138_v56  ;;  %v70_v57 = vpop.xlane.xlu0 %69  ;;  %v162_v59 = vsel %vm37_vm0, %v128_v53, 0.0  ;;  %v514_v53 = vld [vmem:[%s901_s3 + $0x8] sm:$0xff]  }
  0x9d   :  { %v73_v58 = vpop.xlane.xlu1 %72  ;;  %v97_v60 = vmul.f32 0.03125, %v70_v57  ;;  %v121_v62 = vmul.f32 %v689_v54, %v689_v54 }
  0x9e   :  { %v98_v61 = vmul.f32 0.03125, %v73_v58  ;;  %v122_v63 = vmul.f32 %v691_v55, %v691_v55 }
  0x9f   :  { %v700_v0 = vsub.f32 %v604_v12, %v97_v60  ;;  %v141_v2 = vsel %vm37_vm0, %v121_v62, 0.0 }
  0xa0   :  { %v703_v1 = vsub.f32 %v609_v13, %v98_v61  ;;  %163 = vadd.xlane.f32.xlu1 %v162_v59  ;;  %142 = vadd.xlane.f32.xlu0 %v141_v2  ;;  %v52_v3 = vpop.xlane.xlu0 %51  ;;  %v144_v5 = vsel %vm37_vm0, %v122_v63, 0.0 }
  0xa1   :  { %v55_v4 = vpop.xlane.xlu1 %54  ;;  %v91_v6 = vmul.f32 0.03125, %v52_v3  ;;  %v129_v8 = vmul.f32 %v700_v0, %v700_v0 }
  0xa2   :  { %v92_v7 = vmul.f32 0.03125, %v55_v4  ;;  %v130_v9 = vmul.f32 %v703_v1, %v703_v1 }
  0xa3   :  { %v712_v10 = vsub.f32 %v618_v16, %v91_v6  ;;  %v165_v12 = vsel %vm37_vm0, %v129_v8, 0.0 }
  0xa4   :  { %v715_v11 = vsub.f32 %v623_v17, %v92_v7  ;;  %145 = vadd.xlane.f32.xlu1 %v144_v5  ;;  %166 = vadd.xlane.f32.xlu0 %v165_v12  ;;  %v76_v13 = vpop.xlane.xlu0 %75  ;;  %v168_v15 = vsel %vm37_vm0, %v130_v9, 0.0 }
  0xa5   :  { %v79_v14 = vpop.xlane.xlu1 %78  ;;  %v99_v18 = vmul.f32 0.03125, %v76_v13  ;;  %v123_v22 = vmul.f32 %v712_v10, %v712_v10 }
  0xa6   :  { %v100_v19 = vmul.f32 0.03125, %v79_v14  ;;  %v124_v16 = vmul.f32 %v715_v11, %v715_v11 }
  0xa7   :  { %v724_v23 = vsub.f32 %v632_v20, %v99_v18  ;;  %v147_v26 = vsel %vm37_vm0, %v123_v22, 0.0 }
  0xa8   :  { %v727_v17 = vsub.f32 %v637_v21, %v100_v19  ;;  %169 = vadd.xlane.f32.xlu1 %v168_v15  ;;  %148 = vadd.xlane.f32.xlu0 %v147_v26  ;;  %v58_v27 = vpop.xlane.xlu0 %57  ;;  %v150_v31 = vsel %vm37_vm0, %v124_v16, 0.0 }
  0xa9   :  { %v61_v30 = vpop.xlane.xlu1 %60  ;;  %v93_v32 = vmul.f32 0.03125, %v58_v27  ;;  %v131_v34 = vmul.f32 %v724_v23, %v724_v23 }
  0xaa   :  { %v94_v33 = vmul.f32 0.03125, %v61_v30  ;;  %v132_v20 = vmul.f32 %v727_v17, %v727_v17 }
  0xab   :  { %v736_v35 = vsub.f32 %v646_v24, %v93_v32  ;;  %v171_v38 = vsel %vm37_vm0, %v131_v34, 0.0 }
  0xac   :  { %v739_v21 = vsub.f32 %v651_v25, %v94_v33  ;;  %151 = vadd.xlane.f32.xlu1 %v150_v31  ;;  %172 = vadd.xlane.f32.xlu0 %v171_v38  ;;  %v82_v39 = vpop.xlane.xlu0 %81  ;;  %v174_v41 = vsel %vm37_vm0, %v132_v20, 0.0  ;;  %v771_v31 = vld [vmem:[%s902_s1] ss:$0 sm:$0xff] }
  0xad   :  { %v85_v40 = vpop.xlane.xlu1 %84  ;;  %v101_v42 = vmul.f32 0.03125, %v82_v39  ;;  %v125_v46 = vmul.f32 %v736_v35, %v736_v35 }
  0xae   :  { %v102_v43 = vmul.f32 0.03125, %v85_v40  ;;  %v126_v24 = vmul.f32 %v739_v21, %v739_v21 }
  0xaf   :  { %v748_v47 = vsub.f32 %v660_v28, %v101_v42  ;;  %v153_v48 = vsel %vm37_vm0, %v125_v46, 0.0 }
  0xb0   :  { %v751_v25 = vsub.f32 %v665_v29, %v102_v43  ;;  %175 = vadd.xlane.f32.xlu1 %v174_v41  ;;  %154 = vadd.xlane.f32.xlu0 %v153_v48  ;;  %v156_v49 = vsel %vm37_vm0, %v126_v24, 0.0  ;;  %v513_v29 = vld [vmem:[%s901_s3] sm:$0xff]  }
  0xb1   :  { %v133_v50 = vmul.f32 %v748_v47, %v748_v47  ;;  %489 = vmatprep.subr.bf16.mxu0 %v513_v29  ;;  %509 = vmatprep.subr.bf16.mxu1 %v513_v29  ;;  %v778_v43 = vld [vmem:[%s903_s2] ss:$0 sm:$0xff] }
  0xb2   :  { %v134_v51 = vmul.f32 %v751_v25, %v751_v25  ;;  %490 = vmatpush3.bf16.msra.mxu0 %v513_v29  ;;  %511 = vmatpush3.bf16.msra.mxu1 %v513_v29 }
  0xb3   :  { %v177_v52 = vsel %vm37_vm0, %v133_v50, 0.0  ;;  %491 = vmatprep.subr.bf16.mxu0 %v514_v53  ;;  %510 = vmatprep.subr.bf16.mxu1 %v514_v53 }
  0xb4   :  { %157 = vadd.xlane.f32.xlu1 %v156_v49  ;;  %178 = vadd.xlane.f32.xlu0 %v177_v52  ;;  %v180_v28 = vsel %vm37_vm0, %v134_v51, 0.0 }
  0xb6   :  { %492 = vmatpush3.bf16.msra.mxu0 %v514_v53  ;;  %512 = vmatpush3.bf16.msra.mxu1 %v514_v53 }
  0xb8   :  { %181 = vadd.xlane.f32.xlu1 %v180_v28 }
 0x125   :  { %v137_v56 = vpop.xlane.xlu0 %136 }
 0x126   :  { %v183_v57 = vmul.f32 0.03125, %v137_v56 }
 0x128   :  { %v199_v58 = vadd.f32 1e-05, %v183_v57 }
 0x129   :  { %v140_v59 = vpop.xlane.xlu1 %139  ;;  %v161_v60 = vpop.xlane.xlu0 %160 }
 0x12a   :  { %515 = vrsqrt.f32 %v199_v58  ;;  %v184_v61 = vmul.f32 0.03125, %v140_v59  ;;  %v191_v62 = vmul.f32 0.03125, %v161_v60 }
 0x12c   :  { %v200_v63 = vadd.f32 1e-05, %v184_v61  ;;  %v207_v2 = vadd.f32 1e-05, %v191_v62 }
 0x12d   :  { %v164_v3 = vpop.xlane.xlu1 %163  ;;  %v143_v4 = vpop.xlane.xlu0 %142 }
 0x12e   :  { %517 = vrsqrt.f32 %v200_v63  ;;  %v192_v5 = vmul.f32 0.03125, %v164_v3  ;;  %v185_v6 = vmul.f32 0.03125, %v143_v4 }
 0x12f   :  { %519 = vrsqrt.f32 %v207_v2 }
 0x130   :  { %v208_v7 = vadd.f32 1e-05, %v192_v5  ;;  %v201_v8 = vadd.f32 1e-05, %v185_v6 }
 0x131   :  { %v146_v9 = vpop.xlane.xlu1 %145  ;;  %v167_v12 = vpop.xlane.xlu0 %166 }
 0x132   :  { %521 = vrsqrt.f32 %v208_v7  ;;  %v186_v13 = vmul.f32 0.03125, %v146_v9  ;;  %v193_v14 = vmul.f32 0.03125, %v167_v12 }
 0x133   :  { %523 = vrsqrt.f32 %v201_v8 }
 0x134   :  { %v516_v15 = vpop.eup %515  ;;  %v202_v18 = vadd.f32 1e-05, %v186_v13  ;;  %v209_v19 = vadd.f32 1e-05, %v193_v14 }
 0x135   :  { %v170_v22 = vpop.xlane.xlu1 %169  ;;  %v149_v16 = vpop.xlane.xlu0 %148  ;;  %v231_v26 = vmul.f32 %v516_v15, %v671_v36 }
 0x136   :  { %525 = vrsqrt.f32 %v202_v18  ;;  %v194_v27 = vmul.f32 0.03125, %v170_v22  ;;  %v187_v30 = vmul.f32 0.03125, %v149_v16 }
 0x137   :  { %527 = vrsqrt.f32 %v209_v19  ;;  %v254_v41 = vmul.f32 %v771_v31, %v231_v26 }
 0x138   :  { %v518_v32 = vpop.eup %517  ;;  %v210_v33 = vadd.f32 1e-05, %v194_v27  ;;  %v203_v34 = vadd.f32 1e-05, %v187_v30 }
 0x139   :  { %v520_v20 = vpop.eup %519  ;;  %v152_v38 = vpop.xlane.xlu1 %151  ;;  %v232_v40 = vmul.f32 %v518_v32, %v679_v44  ;;  %v277_v28 = vadd.f32 %v778_v43, %v254_v41 }
 0x13a   :  { %v173_v39 = vpop.xlane.xlu0 %172  ;;  %529 = vrsqrt.f32 %v210_v33  ;;  %v188_v36 = vmul.f32 0.03125, %v152_v38  ;;  %v239_v46 = vmul.f32 %v520_v20, %v673_v37 }
 0x13b   :  { %v195_v42 = vmul.f32 0.03125, %v173_v39  ;;  %531 = vrsqrt.f32 %v203_v34  ;;  %v255_v24 = vmul.f32 %v771_v31, %v232_v40 }
 0x13c   :  { %v522_v48 = vpop.eup %521  ;;  %v204_v49 = vadd.f32 1e-05, %v188_v36  ;;  %v262_v56 = vmul.f32 %v771_v31, %v239_v46 }
 0x13d   :  { %v211_v50 = vadd.f32 1e-05, %v195_v42  ;;  %v524_v51 = vpop.eup %523  ;;  %v176_v44 = vpop.xlane.xlu1 %175  ;;  %v278_v29 = vadd.f32 %v778_v43, %v255_v24  ;;  %v240_v53 = vmul.f32 %v522_v48, %v681_v45 }
 0x13e   :  { %v155_v52 = vpop.xlane.xlu0 %154  ;;  %v233_v57 = vmul.f32 %v524_v51, %v689_v54  ;;  %533 = vrsqrt.f32 %v204_v49  ;;  %v196_v37 = vmul.f32 0.03125, %v176_v44  ;;  %v285_v5 = vadd.f32 %v778_v43, %v262_v56 }
 0x13f   :  { %v189_v58 = vmul.f32 0.03125, %v155_v52  ;;  %535 = vrsqrt.f32 %v211_v50  ;;  %v293_v59 = vpack.c.bf16 %v278_v29, %v277_v28  ;;  %v263_v60 = vmul.f32 %v771_v31, %v240_v53 }
 0x140   :  { %v526_v61 = vpop.eup %525  ;;  %v212_v62 = vadd.f32 1e-05, %v196_v37  ;;  %v256_v6 = vmul.f32 %v771_v31, %v233_v57 }
 0x141   :  { %v205_v63 = vadd.f32 1e-05, %v189_v58  ;;  %v528_v2 = vpop.eup %527  ;;  %v234_v3 = vmul.f32 %v526_v61, %v691_v55  ;;  %v158_v4 = vpop.xlane.xlu1 %157  ;;  %493 = vmatprep.mubr.msk.bf16.mxu0 %vm37_vm0, %v293_v59  ;;  %v286_v54 = vadd.f32 %v778_v43, %v263_v60 }
 0x142   :  { %v179_v45 = vpop.xlane.xlu0 %178  ;;  %v241_v7 = vmul.f32 %v528_v2, %v700_v0  ;;  %537 = vrsqrt.f32 %v212_v62  ;;  %v190_v8 = vmul.f32 0.03125, %v158_v4  ;;  %v279_v16 = vadd.f32 %v778_v43, %v256_v6 }
 0x143   :  { %v197_v9 = vmul.f32 0.03125, %v179_v45  ;;  %539 = vrsqrt.f32 %v205_v63  ;;  %v297_v12 = vpack.c.bf16 %v286_v54, %v285_v5  ;;  %v257_v13 = vmul.f32 %v771_v31, %v234_v3 }
 0x144   :  { %v530_v55 = vpop.eup %529  ;;  %v206_v14 = vadd.f32 1e-05, %v190_v8  ;;  %v264_v26 = vmul.f32 %v771_v31, %v241_v7 }
 0x145   :  { %v213_v15 = vadd.f32 1e-05, %v197_v9  ;;  %v532_v18 = vpop.eup %531  ;;  %v242_v19 = vmul.f32 %v530_v55, %v703_v1  ;;  %v182_v22 = vpop.xlane.xlu1 %181  ;;  %501 = vmatprep.mubr.msk.bf16.mxu1 %vm37_vm0, %v297_v12  ;;  %v280_v0 = vadd.f32 %v778_v43, %v257_v13 }
 0x146   :  { %v235_v27 = vmul.f32 %v532_v18, %v712_v10  ;;  %541 = vrsqrt.f32 %v206_v14  ;;  %v198_v30 = vmul.f32 0.03125, %v182_v22  ;;  %v287_v39 = vadd.f32 %v778_v43, %v264_v26 }
 0x147   :  { %543 = vrsqrt.f32 %v213_v15  ;;  %v294_v32 = vpack.c.bf16 %v280_v0, %v279_v16  ;;  %v265_v33 = vmul.f32 %v771_v31, %v242_v19 }
 0x148   :  { %v534_v34 = vpop.eup %533  ;;  %v214_v20 = vadd.f32 1e-05, %v198_v30  ;;  %v258_v41 = vmul.f32 %v771_v31, %v235_v27 }
 0x149   :  { %v536_v1 = vpop.eup %535  ;;  %v236_v38 = vmul.f32 %v534_v34, %v715_v11  ;;  %494 = vmatmul.mubr.msk.bf16.vlgmr.msra.gmra.mrb[0].mxu0 %vm37_vm0, %v294_v32  ;;  %v288_v40 = vadd.f32 %v778_v43, %v265_v33 }
 0x14a   :  { %v243_v10 = vmul.f32 %v536_v1, %v724_v23  ;;  %545 = vrsqrt.f32 %v214_v20  ;;  %v281_v11 = vadd.f32 %v778_v43, %v258_v41 }
 0x14b   :  { %v298_v36 = vpack.c.bf16 %v288_v40, %v287_v39  ;;  %v259_v42 = vmul.f32 %v771_v31, %v236_v38 }
 0x14c   :  { %v538_v46 = vpop.eup %537  ;;  %v266_v50 = vmul.f32 %v771_v31, %v243_v10 }
 0x14d   :  { %v540_v24 = vpop.eup %539  ;;  %v244_v48 = vmul.f32 %v538_v46, %v727_v17  ;;  %502 = vmatmul.mubr.msk.bf16.vlgmr.msra.gmra.mrb[0].mxu1 %vm37_vm0, %v298_v36  ;;  %v282_v49 = vadd.f32 %v778_v43, %v259_v42 }
 0x14e   :  { %v237_v51 = vmul.f32 %v540_v24, %v736_v35  ;;  %v289_v17 = vadd.f32 %v778_v43, %v266_v50 }
 0x14f   :  { %v295_v44 = vpack.c.bf16 %v282_v49, %v281_v11  ;;  %v267_v23 = vmul.f32 %v771_v31, %v244_v48 }
 0x150   :  { %v542_v52 = vpop.eup %541  ;;  %v260_v56 = vmul.f32 %v771_v31, %v237_v51 }
 0x151   :  { %v544_v28 = vpop.eup %543  ;;  %v238_v29 = vmul.f32 %v542_v52, %v739_v21  ;;  %497 = vmatprep.mubr.msk.bf16.mxu0 %vm37_vm0, %v295_v44  ;;  %v290_v53 = vadd.f32 %v778_v43, %v267_v23 }
 0x152   :  { %v245_v57 = vmul.f32 %v544_v28, %v748_v47  ;;  %v283_v21 = vadd.f32 %v778_v43, %v260_v56 }
 0x153   :  { %v299_v37 = vpack.c.bf16 %v290_v53, %v289_v17  ;;  %v261_v35 = vmul.f32 %v771_v31, %v238_v29 }
 0x154   :  { %v546_v58 = vpop.eup %545  ;;  %v268_v61 = vmul.f32 %v771_v31, %v245_v57 }
 0x155   :  { %v246_v59 = vmul.f32 %v546_v58, %v751_v25  ;;  %505 = vmatprep.mubr.msk.bf16.mxu1 %vm37_vm0, %v299_v37  ;;  %v284_v60 = vadd.f32 %v778_v43, %v261_v35  ;;  %v468_v25 = vld [vmem:[%s904_s4] ss:$0 sm:$0xff] }
 0x156   :  { %v291_v47 = vadd.f32 %v778_v43, %v268_v61 }
 0x157   :  { %v296_v62 = vpack.c.bf16 %v284_v60, %v283_v21  ;;  %v269_v63 = vmul.f32 %v771_v31, %v246_v59 }
 0x159   :  { %498 = vmatmul.mubr.msk.bf16.gmra.mrb[4].mxu0 %vm37_vm0, %v296_v62  ;;  %v292_v2 = vadd.f32 %v778_v43, %v269_v63 }
 0x15b   :  { %v300_v3 = vpack.c.bf16 %v292_v2, %v291_v47 }
 0x15d   :  { %506 = vmatmul.mubr.msk.bf16.gmra.mrb[4].mxu1 %vm37_vm0, %v300_v3 }
 0x21c   :  { %v495_v4 = vpop.f32.mrb[0].mxu0 }
 0x21d   :  { %v391_v45 = vadd.f32 %v495_v4, %v468_v25  ;;  %v382_v5 = vpop.f32.mrb[1].mxu0 }
 0x21e   :  { %v383_v54 = vadd.f32 %v468_v25, %v382_v5  ;;  %v496_v6 = vpop.f32.mrb[2].mxu0 }
 0x21f   :  { %448 = vst.msk [vmem:[%s905_s5 + $0x10] sm:$0xff] %vm445_vm1, %v391_v45  ;;  %v394_v31 = vadd.f32 %v496_v6, %v468_v25  ;;  %v385_v43 = vpop.f32.mrb[3].mxu0 }
 0x220   :  { %446 = vst.msk [vmem:[%s905_s5] sm:$0xff] %vm445_vm1, %v383_v54  ;;  %v386_v7 = vadd.f32 %v468_v25, %v385_v43  ;;  %v503_v8 = vpop.f32.mrb[0].mxu1 }
 0x221   :  { %449 = vst.msk [vmem:[%s905_s5 + $0x18] sm:$0xff] %vm445_vm1, %v394_v31  ;;  %v423_v9 = vadd.f32 %v503_v8, %v468_v25  ;;  %v414_v12 = vpop.f32.mrb[1].mxu1 }
 0x222   :  { %447 = vst.msk [vmem:[%s905_s5 + $0x8] sm:$0xff] %vm445_vm1, %v386_v7  ;;  %v415_v13 = vadd.f32 %v468_v25, %v414_v12  ;;  %v504_v55 = vpop.f32.mrb[2].mxu1 }
 0x223   :  { %456 = vst.msk [vmem:[%s905_s5 + $0x50] sm:$0xff] %vm445_vm1, %v423_v9  ;;  %v426_v14 = vadd.f32 %v504_v55, %v468_v25  ;;  %v417_v15 = vpop.f32.mrb[3].mxu1 }
 0x224   :  { %454 = vst.msk [vmem:[%s905_s5 + $0x40] sm:$0xff] %vm445_vm1, %v415_v13  ;;  %v418_v18 = vadd.f32 %v468_v25, %v417_v15 }
 0x225   :  { %457 = vst.msk [vmem:[%s905_s5 + $0x58] sm:$0xff] %vm445_vm1, %v426_v14 }
 0x226   :  { %455 = vst.msk [vmem:[%s905_s5 + $0x48] sm:$0xff] %vm445_vm1, %v418_v18 }
 0x22c   :  { %v499_v19 = vpop.f32.mrb[4].mxu0 }
 0x22d   :  { %v407_v22 = vadd.f32 %v499_v19, %v468_v25  ;;  %v398_v16 = vpop.f32.mrb[5].mxu0 }
 0x22e   :  { %v399_v0 = vadd.f32 %v468_v25, %v398_v16  ;;  %v500_v26 = vpop.f32.mrb[6].mxu0 }
 0x22f   :  { %452 = vst.msk [vmem:[%s905_s5 + $0x30] sm:$0xff] %vm445_vm1, %v407_v22  ;;  %v410_v27 = vadd.f32 %v500_v26, %v468_v25  ;;  %v401_v30 = vpop.f32.mrb[7].mxu0 }
 0x230   :  { %450 = vst.msk [vmem:[%s905_s5 + $0x20] sm:$0xff] %vm445_vm1, %v399_v0  ;;  %v402_v32 = vadd.f32 %v468_v25, %v401_v30  ;;  %v507_v33 = vpop.f32.mrb[4].mxu1 }
 0x231   :  { %453 = vst.msk [vmem:[%s905_s5 + $0x38] sm:$0xff] %vm445_vm1, %v410_v27  ;;  %v439_v34 = vadd.f32 %v507_v33, %v468_v25  ;;  %v430_v20 = vpop.f32.mrb[5].mxu1 }
 0x232   :  { %451 = vst.msk [vmem:[%s905_s5 + $0x28] sm:$0xff] %vm445_vm1, %v402_v32  ;;  %v431_v1 = vadd.f32 %v468_v25, %v430_v20  ;;  %v508_v38 = vpop.f32.mrb[6].mxu1 }
 0x233   :  { %460 = vst.msk [vmem:[%s905_s5 + $0x70] sm:$0xff] %vm445_vm1, %v439_v34  ;;  %v442_v39 = vadd.f32 %v508_v38, %v468_v25  ;;  %v433_v40 = vpop.f32.mrb[7].mxu1 }
 0x234   :  { %458 = vst.msk [vmem:[%s905_s5 + $0x60] sm:$0xff] %vm445_vm1, %v431_v1  ;;  %v434_v41 = vadd.f32 %v468_v25, %v433_v40 }
 0x235   :  { %461 = vst.msk [vmem:[%s905_s5 + $0x78] sm:$0xff] %vm445_vm1, %v442_v39 }
 0x236   :  { %459 = vst.msk [vmem:[%s905_s5 + $0x68] sm:$0xff] %vm445_vm1, %v434_v41 }

</bundles_post_ra>
